<compile_context>
chip_gen: v5e
topology: v5e:2x2
jax: 0.10.0
libtpu: 0.0.40
codegen_flags: <defaults>
</compile_context>

<pallas_src>
import functools

import numpy as np
import jax
import jax.numpy as jnp
from jax.experimental import pallas as pl
from jax.experimental.pallas import tpu as pltpu


def _gated_gcn_kernel(x_ref, adj_ref, wg_ref, bg_ref, wu_ref, bu_ref, y_ref,
                      g_cat_ref, *, heads, bc, nt):
    # x: (B*C, N*T) lane-dense slab covering the whole batch.
    x = x_ref[...]

    # --- update path -------------------------------------------------------
    # Single adjacency matmul for all heads & batches: (H*B*C, B*C) @ (B*C, NT)
    g_all = jnp.dot(adj_ref[...], x, preferred_element_type=jnp.float32)

    # Repack per-head results along lanes into (B*C, H*N*T) scratch.
    # Static, 128-lane-aligned slices -> plain unmasked VMEM stores.
    for h in range(heads):
        g_cat_ref[:, h * nt:(h + 1) * nt] = g_all[h * bc:(h + 1) * bc, :]

    # One K = H*N*T matmul against the concatenated block-diagonal weight.
    upd = jnp.dot(g_cat_ref[...], wu_ref[...],
                  preferred_element_type=jnp.float32) + bu_ref[...]

    # --- gate path ----------------------------------------------------------
    z = jnp.dot(x, wg_ref[...], preferred_element_type=jnp.float32) + bg_ref[...]
    gate = jax.nn.sigmoid(z)

    # --- combine ------------------------------------------------------------
    y = x + gate * (upd - x)                       # == gate*upd + (1-gate)*x
    y_ref[...] = y.astype(y_ref.dtype)


def precompute_gated_gcn_params(nodes1, nodes2, wg, bg, wu, bu, *, B, C, N, T):
    """Grid-invariant precompute. Call ONCE when parameters are set.

    wg: (T, S), bg: (S,)    -- gate_proj   (y = x @ W + b convention)
    wu: (H*T, S), bu: (S,)  -- update_proj
    """
    H = nodes1.shape[0]
    S = wg.shape[1]

    # softmax adjacency with -1e9 diagonal mask, per head: (H, C, C)
    neg_diag = -1e9 * jnp.eye(C, dtype=jnp.float32)
    logits = jnp.einsum('hod,hid->hoi', nodes1, nodes2) + neg_diag[None]
    adj = jax.nn.softmax(logits, axis=-1)

    # Batch-block-diagonal, head-stacked adjacency: (H*B*C, B*C)
    eye_b = jnp.eye(B, dtype=jnp.float32)
    adj_stacked = jnp.concatenate(
        [jnp.kron(eye_b, adj[h]) for h in range(H)], axis=0)

    # Block-diagonal (over spatial nodes N) projections acting on (.., N*T).
    eye_n = jnp.eye(N, dtype=jnp.float32)
    wg_bd = jnp.kron(eye_n, wg)                                  # (N*T, N*S)
    wu_h = wu.reshape(H, T, S)
    wu_cat = jnp.concatenate(
        [jnp.kron(eye_n, wu_h[h]) for h in range(H)], axis=0)    # (H*N*T, N*S)

    bg_bd = jnp.tile(bg, N).reshape(1, N * S)
    bu_bd = jnp.tile(bu, N).reshape(1, N * S)
    return adj_stacked, wg_bd, bg_bd, wu_cat, bu_bd


def gated_gcn_forward(x, adj_stacked, wg_bd, bg_bd, wu_cat, bu_bd):
    """x: (B, C, N, T) float32 -> (B, C, N, T). Precomputed params from above."""
    B, C, N, T = x.shape
    BC, NT = B * C, N * T
    NS = wg_bd.shape[1]
    H = adj_stacked.shape[0] // BC
    HNT = H * NT
    assert NS == NT, "forward semantics require seq_out == seq_in"

    # Free contiguous view -> one lane-dense (B*C, N*T) slab.
    x_flat = x.reshape(BC, NT)

    kernel = functools.partial(_gated_gcn_kernel, heads=H, bc=BC, nt=NT)
    y_flat = pl.pallas_call(
        kernel,
        out_shape=jax.ShapeDtypeStruct((BC, NT), x.dtype),
        grid_spec=pltpu.PrefetchScalarGridSpec(
            num_scalar_prefetch=0,
            grid=(1,),                                            # single step
            in_specs=[
                pl.BlockSpec((BC, NT), lambda i: (0, 0)),         # x slab
                pl.BlockSpec((H * BC, BC), lambda i: (0, 0)),     # adj stacked
                pl.BlockSpec((NT, NS), lambda i: (0, 0)),         # gate W (blkdiag)
                pl.BlockSpec((1, NS), lambda i: (0, 0)),          # gate b (tiled)
                pl.BlockSpec((HNT, NS), lambda i: (0, 0)),        # upd W (concat blkdiag)
                pl.BlockSpec((1, NS), lambda i: (0, 0)),          # upd b (tiled)
            ],
            out_specs=pl.BlockSpec((BC, NT), lambda i: (0, 0)),
            scratch_shapes=[pltpu.VMEM((BC, HNT), jnp.float32)],  # G_cat
        ),
        compiler_params=pltpu.CompilerParams(
            dimension_semantics=("arbitrary",)),
    )(x_flat, adj_stacked, wg_bd, bg_bd, wu_cat, bu_bd)

    return y_flat.reshape(B, C, N, T)


def gated_gcn_reference(x, nodes1, nodes2, wg, bg, wu, bu):
    """Pure-JAX reference mirroring the PyTorch forward exactly."""
    B, C, N, T = x.shape
    neg_inf = -1e9 * jnp.eye(C, dtype=x.dtype)[None]
    adj = jnp.einsum('hod,hid->hoi', nodes1, nodes2) + neg_inf
    adj = jax.nn.softmax(adj, axis=-1)
    g = jnp.einsum('hoi,bins->bhons', adj, x)                # (B, H, C, N, T)
    g = jnp.transpose(g, (0, 2, 3, 1, 4)).reshape(B, C, N, -1)
    g = g @ wu + bu                                          # update_proj
    gate = jax.nn.sigmoid(x @ wg + bg)                       # gate_proj
    return gate * g + (1.0 - gate) * x


if __name__ == "__main__":
    key = jax.random.PRNGKey(0)
    B, C, N = 2, 4, 16          # batch, channels (graph nodes), spatial nodes
    seq_in = seq_out = 8        # forward requires seq_out == seq_in
    hid_dim = 32
    heads = 3

    ks = jax.random.split(key, 7)
    x = jax.random.normal(ks[0], (B, C, N, seq_in), jnp.float32)
    nodes1 = jax.random.normal(ks[1], (heads, C, hid_dim), jnp.float32)
    nodes2 = jax.random.normal(ks[2], (heads, C, hid_dim), jnp.float32)
    # Linear weights stored transposed (in_features, out_features): y = x @ W + b
    wg = jax.random.normal(ks[3], (seq_in, seq_out), jnp.float32) * 0.1
    bg = jax.random.normal(ks[4], (seq_out,), jnp.float32) * 0.1
    wu = jax.random.normal(ks[5], (heads * seq_in, seq_out), jnp.float32) * 0.1
    bu = jax.random.normal(ks[6], (seq_out,), jnp.float32) * 0.1

    # Grid-invariant precompute: done ONCE (outside the per-call path).
    params = precompute_gated_gcn_params(
        nodes1, nodes2, wg, bg, wu, bu, B=B, C=C, N=N, T=seq_in)
    params = jax.block_until_ready(params)

    y = gated_gcn_forward(x, *params)
    y = jax.block_until_ready(y)

    y_ref = gated_gcn_reference(x, nodes1, nodes2, wg, bg, wu, bu)
    np.testing.assert_allclose(np.asarray(y), np.asarray(y_ref),
                               rtol=1e-4, atol=1e-4)
    print("KERNEL_OK")
</pallas_src>

<mosaic_0001>
module attributes {stable_mosaic.version = 11 : i64} {
  func.func @_gated_gcn_kernel(%arg0: i32, %arg1: memref<8x128xf32, #tpu.memory_space<vmem>>, %arg2: memref<24x8xf32, #tpu.memory_space<vmem>>, %arg3: memref<128x128xf32, #tpu.memory_space<vmem>>, %arg4: memref<1x128xf32, #tpu.memory_space<vmem>>, %arg5: memref<384x128xf32, #tpu.memory_space<vmem>>, %arg6: memref<1x128xf32, #tpu.memory_space<vmem>>, %arg7: memref<8x128xf32, #tpu.memory_space<vmem>>, %arg8: memref<8x384xf32, #tpu.memory_space<vmem>>) attributes {dimension_semantics = [#tpu.dimension_semantics<arbitrary>], iteration_bounds = array<i64: 1>, scalar_prefetch = 0 : i64, scratch_operands = 1 : i64, tpu.core_type = #tpu.core_type<tc>, window_params = [{pipeline_mode = #tpu.pipeline_mode<synchronous>, transform_indices = @transform_0, window_bounds = array<i64: 8, 128>}, {pipeline_mode = #tpu.pipeline_mode<synchronous>, transform_indices = @transform_1, window_bounds = array<i64: 24, 8>}, {pipeline_mode = #tpu.pipeline_mode<synchronous>, transform_indices = @transform_2, window_bounds = array<i64: 128, 128>}, {pipeline_mode = #tpu.pipeline_mode<synchronous>, transform_indices = @transform_3, window_bounds = array<i64: 1, 128>}, {pipeline_mode = #tpu.pipeline_mode<synchronous>, transform_indices = @transform_4, window_bounds = array<i64: 384, 128>}, {pipeline_mode = #tpu.pipeline_mode<synchronous>, transform_indices = @transform_5, window_bounds = array<i64: 1, 128>}, {pipeline_mode = #tpu.pipeline_mode<synchronous>, transform_indices = @transform_6, window_bounds = array<i64: 8, 128>}]} {
    %c0 = arith.constant 0 : index
    %c0_0 = arith.constant 0 : index
    %0 = vector.load %arg1[%c0, %c0_0] : memref<8x128xf32, #tpu.memory_space<vmem>>, vector<8x128xf32>
    %c0_1 = arith.constant 0 : index
    %c0_2 = arith.constant 0 : index
    %1 = vector.load %arg2[%c0_1, %c0_2] : memref<24x8xf32, #tpu.memory_space<vmem>>, vector<24x8xf32>
    %cst = arith.constant dense<0.000000e+00> : vector<24x128xf32>
    %2 = tpu.matmul %1, %0, %cst {dimension_numbers = #tpu.dot_dimension_numbers<[1], [0], [0], [1], [0, 0, 1, 1], [], []>} : vector<24x8xf32>, vector<8x128xf32>, vector<24x128xf32> -> vector<24x128xf32>
    %3 = vector.extract_strided_slice %2 {offsets = [0, 0], sizes = [8, 128], strides = [1, 1]} : vector<24x128xf32> to vector<8x128xf32>
    %c0_3 = arith.constant 0 : index
    %c0_4 = arith.constant 0 : index
    %4 = vector.load %arg8[%c0_3, %c0_4] : memref<8x384xf32, #tpu.memory_space<vmem>>, vector<8x128xf32>
    tpu.vector_store %arg8[%c0_3, %c0_4], %3 {strides = array<i32>} : memref<8x384xf32, #tpu.memory_space<vmem>>, vector<8x128xf32>,
    %5 = vector.extract_strided_slice %2 {offsets = [8, 0], sizes = [8, 128], strides = [1, 1]} : vector<24x128xf32> to vector<8x128xf32>
    %c0_5 = arith.constant 0 : index
    %c128 = arith.constant 128 : index
    %6 = vector.load %arg8[%c0_5, %c128] : memref<8x384xf32, #tpu.memory_space<vmem>>, vector<8x128xf32>
    tpu.vector_store %arg8[%c0_5, %c128], %5 {strides = array<i32>} : memref<8x384xf32, #tpu.memory_space<vmem>>, vector<8x128xf32>,
    %7 = vector.extract_strided_slice %2 {offsets = [16, 0], sizes = [8, 128], strides = [1, 1]} : vector<24x128xf32> to vector<8x128xf32>
    %c0_6 = arith.constant 0 : index
    %c256 = arith.constant 256 : index
    %8 = vector.load %arg8[%c0_6, %c256] : memref<8x384xf32, #tpu.memory_space<vmem>>, vector<8x128xf32>
    tpu.vector_store %arg8[%c0_6, %c256], %7 {strides = array<i32>} : memref<8x384xf32, #tpu.memory_space<vmem>>, vector<8x128xf32>,
    %c0_7 = arith.constant 0 : index
    %c0_8 = arith.constant 0 : index
    %9 = vector.load %arg8[%c0_7, %c0_8] : memref<8x384xf32, #tpu.memory_space<vmem>>, vector<8x384xf32>
    %c0_9 = arith.constant 0 : index
    %c0_10 = arith.constant 0 : index
    %10 = vector.load %arg5[%c0_9, %c0_10] : memref<384x128xf32, #tpu.memory_space<vmem>>, vector<384x128xf32>
    %cst_11 = arith.constant dense<0.000000e+00> : vector<8x128xf32>
    %11 = tpu.matmul %9, %10, %cst_11 {dimension_numbers = #tpu.dot_dimension_numbers<[1], [0], [0], [1], [0, 0, 1, 1], [], []>} : vector<8x384xf32>, vector<384x128xf32>, vector<8x128xf32> -> vector<8x128xf32>
    %c0_12 = arith.constant 0 : index
    %c0_13 = arith.constant 0 : index
    %12 = vector.load %arg6[%c0_12, %c0_13] : memref<1x128xf32, #tpu.memory_space<vmem>>, vector<1x128xf32>
    %13 = vector.broadcast %12 : vector<1x128xf32> to vector<8x128xf32>
    %14 = arith.addf %11, %13 : vector<8x128xf32>
    %c0_14 = arith.constant 0 : index
    %c0_15 = arith.constant 0 : index
    %15 = vector.load %arg3[%c0_14, %c0_15] : memref<128x128xf32, #tpu.memory_space<vmem>>, vector<128x128xf32>
    %cst_16 = arith.constant dense<0.000000e+00> : vector<8x128xf32>
    %16 = tpu.matmul %0, %15, %cst_16 {dimension_numbers = #tpu.dot_dimension_numbers<[1], [0], [0], [1], [0, 0, 1, 1], [], []>} : vector<8x128xf32>, vector<128x128xf32>, vector<8x128xf32> -> vector<8x128xf32>
    %c0_17 = arith.constant 0 : index
    %c0_18 = arith.constant 0 : index
    %17 = vector.load %arg4[%c0_17, %c0_18] : memref<1x128xf32, #tpu.memory_space<vmem>>, vector<1x128xf32>
    %18 = vector.broadcast %17 : vector<1x128xf32> to vector<8x128xf32>
    %19 = arith.addf %16, %18 : vector<8x128xf32>
    %20 = arith.negf %19 : vector<8x128xf32>
    %21 = math.exp %20 : vector<8x128xf32>
    %cst_19 = arith.constant 1.000000e+00 : f32
    %22 = vector.broadcast %cst_19 : f32 to vector<8x128xf32>
    %23 = arith.addf %22, %21 : vector<8x128xf32>
    %24 = arith.divf %22, %23 : vector<8x128xf32>
    %25 = arith.subf %14, %0 : vector<8x128xf32>
    %26 = arith.mulf %24, %25 : vector<8x128xf32>
    %27 = arith.addf %0, %26 : vector<8x128xf32>
    %c0_20 = arith.constant 0 : index
    %c0_21 = arith.constant 0 : index
    %28 = vector.load %arg7[%c0_20, %c0_21] : memref<8x128xf32, #tpu.memory_space<vmem>>, vector<8x128xf32>
    tpu.vector_store %arg7[%c0_20, %c0_21], %27 {strides = array<i32>} : memref<8x128xf32, #tpu.memory_space<vmem>>, vector<8x128xf32>,
    return
  }
  func.func @transform_0(%arg0: i32) -> (i32, i32) {
    %c0_i32 = arith.constant 0 : i32
    %c0_i32_0 = arith.constant 0 : i32
    %c0_i32_1 = arith.constant 0 : i32
    return %c0_i32, %c0_i32_0 : i32, i32
  }
  func.func @transform_1(%arg0: i32) -> (i32, i32) {
    %c0_i32 = arith.constant 0 : i32
    %c0_i32_0 = arith.constant 0 : i32
    %c0_i32_1 = arith.constant 0 : i32
    return %c0_i32, %c0_i32_0 : i32, i32
  }
  func.func @transform_2(%arg0: i32) -> (i32, i32) {
    %c0_i32 = arith.constant 0 : i32
    %c0_i32_0 = arith.constant 0 : i32
    %c0_i32_1 = arith.constant 0 : i32
    return %c0_i32, %c0_i32_0 : i32, i32
  }
  func.func @transform_3(%arg0: i32) -> (i32, i32) {
    %c0_i32 = arith.constant 0 : i32
    %c0_i32_0 = arith.constant 0 : i32
    %c0_i32_1 = arith.constant 0 : i32
    return %c0_i32, %c0_i32_0 : i32, i32
  }
  func.func @transform_4(%arg0: i32) -> (i32, i32) {
    %c0_i32 = arith.constant 0 : i32
    %c0_i32_0 = arith.constant 0 : i32
    %c0_i32_1 = arith.constant 0 : i32
    return %c0_i32, %c0_i32_0 : i32, i32
  }
  func.func @transform_5(%arg0: i32) -> (i32, i32) {
    %c0_i32 = arith.constant 0 : i32
    %c0_i32_0 = arith.constant 0 : i32
    %c0_i32_1 = arith.constant 0 : i32
    return %c0_i32, %c0_i32_0 : i32, i32
  }
  func.func @transform_6(%arg0: i32) -> (i32, i32) {
    %c0_i32 = arith.constant 0 : i32
    %c0_i32_0 = arith.constant 0 : i32
    %c0_i32_1 = arith.constant 0 : i32
    return %c0_i32, %c0_i32_0 : i32, i32
  }
}

</mosaic_0001>

<bundles_post_ra>
// kernel: tpu_custom_call.1
= control target key start
LH: loop header
LB: loop body
LE: loop exit
PB: predicated region body
PF: predicated region fallthrough
CT: control target
= control target key end

     0   :  { %11 = vsyncpa [#allocation4], 0  ;;  %s464_s0 = inlined_call_operand.vmem [shape: f32[8,128], index: 0, kind: input, shape index: {}]   ;;  %s465_s1 = inlined_call_operand.vmem [shape: f32[24,8], index: 1, kind: input, shape index: {}]   ;;  %s466_s2 = inlined_call_operand.hbm [shape: f32[128,128], index: 2, kind: input, shape index: {}]   ;;  %s467_s3 = inlined_call_operand.vmem [shape: f32[1,128], index: 3, kind: input, shape index: {}]   ;;  %s468_s4 = inlined_call_operand.hbm [shape: f32[384,128], index: 4, kind: input, shape index: {}]   ;;  %s469_s5 = inlined_call_operand.vmem [shape: f32[1,128], index: 5, kind: input, shape index: {}]   ;;  %s470_s6 = inlined_call_operand.hbm [shape: f32[8,128], index: 6, kind: output, shape index: {}]  }
   0x1   :  { %12 = vsyncpa [#allocation7], 0 }
   0x2   :  { %13 = vsyncpa [#allocation5], 0  ;;  %s22_s23 = sshll.u32 %s466_s2, 4  ;;  %s388_s24 = smov [#allocation3]   ;;  %s23_s23 = int_to_ptr.hbm [resolvable:$true] %s22_s23 }
   0x3   :  { %s24_s25 = sshll.u32 %s388_s24, 4  ;;  %s37_s28 = sshll.u32 %s468_s4, 4  ;;  %s25_s25 = int_to_ptr.vmem [resolvable:$true] %s24_s25  ;;  %s38_s28 = int_to_ptr.hbm [resolvable:$true] %s37_s28 }
   0x4   :  { %s389_s29 = smov 128   ;;  %s390_s30 = smov 8  }
   0x5   :  { %30 = dma.hbm_to_vmem [thread:$0]  %s23_s23, 2048, %s25_s25, [#allocation4], %s389_s29, %s389_s29, %s390_s30  }
   0x6   :  { %s391_s7 = smov [#allocation6]  }
   0x7   :  { %s39_s8 = sshll.u32 %s391_s7, 4  ;;  %s40_s8 = int_to_ptr.vmem [resolvable:$true] %s39_s8 }
   0x8   :  { %45 = dma.hbm_to_vmem [thread:$0]  %s38_s28, 6144, %s40_s8, [#allocation7], %s389_s29, %s389_s29, %s390_s30  }
   0x9   :  { %382 = dma.done.wait [#allocation4], 2048  }
   0xa   :  { %383 = vsyncadd [#allocation4], 4294965248 }
   0xb   :  { %384 = dma.done.wait [#allocation7], 6144  }
   0xc   :  { %385 = vsyncadd [#allocation7], 4294961152  ;;  %vm60_vm0 = vcmask 64512   ;;  %v437_v0 = vld [vmem:[%s464_s0] sm:$0xff]  ;;  %v229_v2 = vld [vmem:[#allocation3 + $0x78] sm:$0xff]  ;;  %s284_s19 = sshll.u32 %s470_s6, 4  ;;  %s285_s19 = int_to_ptr.hbm [resolvable:$true] %s284_s19 }
   0xd   :  { %v57_v1 = vld [vmem:[%s465_s1] sm:$0xff]  ;;  %85 = vmatpush.msra.mxu0 %v437_v0  ;;  %v228_v3 = vld [vmem:[#allocation3 + $0x70] sm:$0xff]  ;;  %v227_v4 = vld [vmem:[#allocation3 + $0x68] sm:$0xff] }
   0xe   :  { %295 = vmatmul.msk.f32.vlgmr.msra.gmra.mxu0 %vm60_vm0, %v57_v1  ;;  %v117_v5 = vld [vmem:[#allocation6 + $0x78] sm:$0xff]  ;;  %v116_v6 = vld [vmem:[#allocation6 + $0x70] sm:$0xff]  ;;  %v226_v7 = vld [vmem:[#allocation3 + $0x60] sm:$0xff] }
   0xf   :  { %234 = vmatpush.msrb.mxu0 %v229_v2  ;;  %154 = vmatpush.msra.mxu1 %v117_v5  ;;  %v115_v8 = vld [vmem:[#allocation6 + $0x68] sm:$0xff]  ;;  %v133_v10 = vld [vmem:[#allocation6 + $0xf8] sm:$0xff]  ;;  %v114_v12 = vld [vmem:[#allocation6 + $0x60] sm:$0xff] }
  0x10   :  { %v58_v9 = vld [vmem:[%s465_s1 + $0x8] sm:$0xff]  ;;  %v225_v11 = vld [vmem:[#allocation3 + $0x58] sm:$0xff]  ;;  %174 = vmatpush.msra.mxu2 %v133_v10  ;;  %v132_v13 = vld [vmem:[#allocation6 + $0xf0] sm:$0xff] }
  0x11   :  { %235 = vmatpush.msrb.mxu0 %v228_v3  ;;  %155 = vmatpush.msra.mxu1 %v116_v6  ;;  %v131_v14 = vld [vmem:[#allocation6 + $0xe8] sm:$0xff]  ;;  %v224_v15 = vld [vmem:[#allocation3 + $0x50] sm:$0xff]  ;;  %v113_v16 = vld [vmem:[#allocation6 + $0x58] sm:$0xff] }
  0x12   :  { %175 = vmatpush.msra.mxu2 %v132_v13  ;;  %v130_v17 = vld [vmem:[#allocation6 + $0xe0] sm:$0xff]  ;;  %v149_v18 = vld [vmem:[#allocation6 + $0x178] sm:$0xff]  ;;  %v223_v19 = vld [vmem:[#allocation3 + $0x48] sm:$0xff] }
  0x13   :  { %236 = vmatpush.msrb.mxu0 %v227_v4  ;;  %156 = vmatpush.msra.mxu1 %v115_v8  ;;  %v112_v20 = vld [vmem:[#allocation6 + $0x50] sm:$0xff]  ;;  %v129_v22 = vld [vmem:[#allocation6 + $0xd8] sm:$0xff]  ;;  %v147_v23 = vld [vmem:[#allocation6 + $0x168] sm:$0xff] }
  0x14   :  { %176 = vmatpush.msra.mxu2 %v131_v14  ;;  %194 = vmatpush.msra.mxu3 %v149_v18  ;;  %v148_v21 = vld [vmem:[#allocation6 + $0x170] sm:$0xff]  ;;  %v222_v24 = vld [vmem:[#allocation3 + $0x40] sm:$0xff]  ;;  %v111_v25 = vld [vmem:[#allocation6 + $0x48] sm:$0xff] }
  0x15   :  { %237 = vmatpush.msrb.mxu0 %v226_v7  ;;  %157 = vmatpush.msra.mxu1 %v114_v12  ;;  %v59_v26 = vld [vmem:[%s465_s1 + $0x10] sm:$0xff]  ;;  %v221_v28 = vld [vmem:[#allocation3 + $0x38] sm:$0xff]  ;;  %v110_v29 = vld [vmem:[#allocation6 + $0x40] sm:$0xff] }
  0x16   :  { %296 = vmatmul.msk.f32.gmra.mxu0 %vm60_vm0, %v58_v9  ;;  %177 = vmatpush.msra.mxu2 %v130_v17  ;;  %v128_v27 = vld [vmem:[#allocation6 + $0xd0] sm:$0xff]  ;;  %v127_v30 = vld [vmem:[#allocation6 + $0xc8] sm:$0xff]  ;;  %v146_v31 = vld [vmem:[#allocation6 + $0x160] sm:$0xff] }
  0x17   :  { %238 = vmatpush.msrb.mxu0 %v225_v11  ;;  %158 = vmatpush.msra.mxu1 %v113_v16  ;;  %v220_v32 = vld [vmem:[#allocation3 + $0x30] sm:$0xff]  ;;  %v109_v33 = vld [vmem:[#allocation6 + $0x38] sm:$0xff]  ;;  %v126_v34 = vld [vmem:[#allocation6 + $0xc0] sm:$0xff] }
  0x18   :  { %195 = vmatpush.msra.mxu3 %v148_v21  ;;  %178 = vmatpush.msra.mxu2 %v129_v22  ;;  %v145_v35 = vld [vmem:[#allocation6 + $0x158] sm:$0xff]  ;;  %v219_v36 = vld [vmem:[#allocation3 + $0x28] sm:$0xff]  ;;  %v108_v37 = vld [vmem:[#allocation6 + $0x30] sm:$0xff] }
  0x19   :  { %239 = vmatpush.msrb.mxu0 %v224_v15  ;;  %159 = vmatpush.msra.mxu1 %v112_v20  ;;  %v125_v38 = vld [vmem:[#allocation6 + $0xb8] sm:$0xff]  ;;  %v144_v39 = vld [vmem:[#allocation6 + $0x150] sm:$0xff]  ;;  %v218_v40 = vld [vmem:[#allocation3 + $0x20] sm:$0xff] }
  0x1a   :  { %196 = vmatpush.msra.mxu3 %v147_v23  ;;  %179 = vmatpush.msra.mxu2 %v128_v27  ;;  %v107_v41 = vld [vmem:[#allocation6 + $0x28] sm:$0xff]  ;;  %v124_v42 = vld [vmem:[#allocation6 + $0xb0] sm:$0xff]  ;;  %v217_v44 = vld [vmem:[#allocation3 + $0x18] sm:$0xff] }
  0x1b   :  { %240 = vmatpush.msrb.mxu0 %v223_v19  ;;  %160 = vmatpush.msra.mxu1 %v111_v25  ;;  %v143_v43 = vld [vmem:[#allocation6 + $0x148] sm:$0xff]  ;;  %v106_v45 = vld [vmem:[#allocation6 + $0x20] sm:$0xff]  ;;  %v216_v47 = vld [vmem:[#allocation3 + $0x10] sm:$0xff] }
  0x1c   :  { %180 = vmatpush.msra.mxu2 %v127_v30  ;;  %197 = vmatpush.msra.mxu3 %v146_v31  ;;  %v123_v46 = vld [vmem:[#allocation6 + $0xa8] sm:$0xff]  ;;  %v105_v48 = vld [vmem:[#allocation6 + $0x18] sm:$0xff]  ;;  %v104_v50 = vld [vmem:[#allocation6 + $0x10] sm:$0xff] }
  0x1d   :  { %241 = vmatpush.msrb.mxu0 %v222_v24  ;;  %161 = vmatpush.msra.mxu1 %v110_v29  ;;  %v215_v49 = vld [vmem:[#allocation3 + $0x8] sm:$0xff]  ;;  %v214_v51 = vld [vmem:[#allocation3] sm:$0xff]  ;;  %v121_v56 = vld [vmem:[#allocation6 + $0x98] sm:$0xff] }
  0x1e   :  { %297 = vmatmul.msk.f32.gmra.mxu0 %vm60_vm0, %v59_v26  ;;  %181 = vmatpush.msra.mxu2 %v126_v34  ;;  %v103_v52 = vld [vmem:[#allocation6 + $0x8] sm:$0xff]  ;;  %v102_v53 = vld [vmem:[#allocation6] sm:$0xff]  ;;  %v141_v57 = vld [vmem:[#allocation6 + $0x138] sm:$0xff] }
  0x1f   :  { %242 = vmatpush.msrb.mxu0 %v221_v28  ;;  %162 = vmatpush.msra.mxu1 %v109_v33  ;;  %v122_v54 = vld [vmem:[#allocation6 + $0xa0] sm:$0xff]  ;;  %v120_v58 = vld [vmem:[#allocation6 + $0x90] sm:$0xff]  ;;  %v119_v60 = vld [vmem:[#allocation6 + $0x88] sm:$0xff] }
  0x20   :  { %198 = vmatpush.msra.mxu3 %v145_v35  ;;  %182 = vmatpush.msra.mxu2 %v125_v38  ;;  %v142_v55 = vld [vmem:[#allocation6 + $0x140] sm:$0xff]  ;;  %v140_v59 = vld [vmem:[#allocation6 + $0x130] sm:$0xff]  ;;  %v139_v61 = vld [vmem:[#allocation6 + $0x128] sm:$0xff] }
  0x21   :  { %243 = vmatpush.msrb.mxu0 %v220_v32  ;;  %163 = vmatpush.msra.mxu1 %v108_v37  ;;  %v118_v62 = vld [vmem:[#allocation6 + $0x80] sm:$0xff]  ;;  %v137_v1 = vld [vmem:[#allocation6 + $0x118] sm:$0xff]  ;;  %v136_v2 = vld [vmem:[#allocation6 + $0x110] sm:$0xff] }
  0x22   :  { %199 = vmatpush.msra.mxu3 %v144_v39  ;;  %183 = vmatpush.msra.mxu2 %v124_v42  ;;  %v138_v63 = vld [vmem:[#allocation6 + $0x120] sm:$0xff]  ;;  %v135_v3 = vld [vmem:[#allocation6 + $0x108] sm:$0xff] }
  0x23   :  { %244 = vmatpush.msrb.mxu0 %v219_v36  ;;  %164 = vmatpush.msra.mxu1 %v107_v41  ;;  %v134_v4 = vld [vmem:[#allocation6 + $0x100] sm:$0xff] }
  0x24   :  { %200 = vmatpush.msra.mxu3 %v143_v43  ;;  %184 = vmatpush.msra.mxu2 %v123_v46  ;;  %v304_v8 = vld [vmem:[%s467_s3] ss:$0 sm:$0xff]  ;;  %s392_s3 = smov [#allocation8]  }
  0x25   :  { %245 = vmatpush.msrb.mxu0 %v218_v40  ;;  %165 = vmatpush.msra.mxu1 %v106_v45  ;;  %v305_v17 = vld [vmem:[%s469_s5] ss:$0 sm:$0xff]  ;;  %s282_s5 = sshll.u32 %s392_s3, 4  ;;  %s283_s5 = int_to_ptr.vmem [resolvable:$true] %s282_s5 }
  0x26   :  { %185 = vmatpush.msra.mxu2 %v122_v54  ;;  %201 = vmatpush.msra.mxu3 %v142_v55 }
  0x27   :  { %246 = vmatpush.msrb.mxu0 %v217_v44  ;;  %166 = vmatpush.msra.mxu1 %v105_v48 }
  0x28   :  { %186 = vmatpush.msra.mxu2 %v121_v56  ;;  %202 = vmatpush.msra.mxu3 %v141_v57 }
  0x29   :  { %247 = vmatpush.msrb.mxu0 %v216_v47  ;;  %167 = vmatpush.msra.mxu1 %v104_v50 }
  0x2a   :  { %187 = vmatpush.msra.mxu2 %v120_v58  ;;  %203 = vmatpush.msra.mxu3 %v140_v59 }
  0x2b   :  { %248 = vmatpush.msrb.mxu0 %v215_v49  ;;  %168 = vmatpush.msra.mxu1 %v103_v52 }
  0x2c   :  { %188 = vmatpush.msra.mxu2 %v119_v60  ;;  %204 = vmatpush.msra.mxu3 %v139_v61 }
  0x2d   :  { %249 = vmatpush.msrb.mxu0 %v214_v51  ;;  %169 = vmatpush.msra.mxu1 %v102_v53 }
  0x2e   :  { %250 = vmatmul.f32.vlgmr.msrb.gmra.mxu0 %v437_v0  ;;  %189 = vmatpush.msra.mxu2 %v118_v62 }
  0x2f   :  { %205 = vmatpush.msra.mxu3 %v138_v63 }
  0x31   :  { %206 = vmatpush.msra.mxu3 %v137_v1 }
  0x33   :  { %207 = vmatpush.msra.mxu3 %v136_v2 }
  0x35   :  { %208 = vmatpush.msra.mxu3 %v135_v3 }
  0x37   :  { %209 = vmatpush.msra.mxu3 %v134_v4 }
  0x8b   :  { %v87_v5 = vpop.f32.mrf.mxu0 }
  0x8c   :  { %170 = vmatmul.f32.vlgmr.msra.gmra.mxu1 %v87_v5 }
  0x93   :  { %v90_v6 = vpop.f32.mrf.mxu0 }
  0x94   :  { %190 = vmatmul.f32.vlgmr.msra.gmra.mxu2 %v90_v6 }
  0x9b   :  { %v93_v7 = vpop.f32.mrf.mxu0 }
  0x9c   :  { %210 = vmatmul.f32.vlgmr.msra.gmra.mxu3 %v93_v7 }
  0xab   :  { %v251_v9 = vpop.f32.mrf.mxu0 }
  0xac   :  { %v252_v10 = vadd.f32 %v304_v8, %v251_v9 }
  0xae   :  { %v298_v11 = vmul.f32 -1.442695, %v252_v10 }
  0xb0   :  { %306 = vpow2.f32 %v298_v11 }
  0xb6   :  { %v307_v12 = vpop.eup %306 }
  0xb7   :  { %v257_v13 = vadd.f32 1.0, %v307_v12 }
  0xb9   :  { %308 = vrcp.f32 %v257_v13  ;;  %vm263_vm1 = vweird.f32 %v257_v13  ;;  %v269_v21 = vand.u32 2147483648, %v257_v13  ;;  %v267_v24 = vand.u32 2147483647, %v257_v13 }
  0xbb   :  { %v270_v27 = vor.u32 1.1754944e-38, %v269_v21  ;;  %vm268_vm4 = vcmp.eq.f32.partialorder %v267_v24, 8.507059e+37 }
  0xbf   :  { %v309_v14 = vpop.eup %308 }
  0xc0   :  { %v259_v15 = vmul.f32 %v309_v14, %v257_v13  ;;  %vm264_vm2 = vweird.f32 %v309_v14 }
  0xc1   :  { %vm265_vm3 = vmor %vm263_vm1, %vm264_vm2 }
  0xc2   :  { %v260_v16 = vsub.f32 1.0, %v259_v15 }
  0xc4   :  { %v261_v18 = vmul.f32 %v309_v14, %v260_v16 }
  0xc6   :  { %v262_v23 = vadd.f32 %v309_v14, %v261_v18 }
  0xc8   :  { %v266_v29 = vsel %vm265_vm3, %v309_v14, %v262_v23 }
  0xc9   :  { %v271_v31 = vsel %vm268_vm4, %v270_v27, %v266_v29 }
 0x109   :  { %v171_v19 = vpop.f32.mrf.mxu1 }
 0x10a   :  { %v172_v22 = vadd.f32 %v305_v17, %v171_v19 }
 0x117   :  { %v191_v20 = vpop.f32.mrf.mxu2 }
 0x118   :  { %v192_v25 = vadd.f32 %v191_v20, %v172_v22 }
 0x11f   :  { %v211_v26 = vpop.f32.mrf.mxu3 }
 0x120   :  { %v212_v28 = vadd.f32 %v211_v26, %v192_v25 }
 0x122   :  { %v273_v30 = vsub.f32 %v212_v28, %v437_v0 }
 0x124   :  { %v274_v32 = vmul.f32 %v273_v30, %v271_v31 }
 0x126   :  { %v275_v33 = vadd.f32 %v274_v32, %v437_v0 }
 0x128   :  { %276 = vst [vmem:[#allocation8] sm:$0xff] %v275_v33 }
 0x129   :  { %287 = dma.vmem_to_hbm [thread:$0]  %s283_s5, 128, %s285_s19, [#allocation5]  }
 0x12a   :  { %386 = dma.done.wait [#allocation5], 128  }
 0x12b   :  { %387 = vsyncadd [#allocation5], 4294967168 }
 0x12c   :  { %292 = vsyncpa [#allocation4], 1 }
 0x12d   :  { %293 = vsyncpa [#allocation7], 1 }
 0x12e   :  { %294 = vsyncpa [#allocation5], 1 }

</bundles_post_ra>
